<compile_context>
chip_gen: v7x
topology: tpu7x:2x2x1
jax: 0.10.0
libtpu: 0.0.40
codegen_flags: <defaults>
</compile_context>

<pallas_src>
import numpy as np
import jax
import jax.numpy as jnp
from jax.experimental import pallas as pl
from jax.experimental.pallas import tpu as pltpu


# ----------------------------- Pallas kernel --------------------------------
def intra_agg_kernel(mask_ref, embed_ref, inv_ref, out_ref, acc_ref):
    """Accumulate mask @ embed over U tiles; finalize with per-row scale + ReLU."""
    k = pl.program_id(1)  # reduction (U) axis, last grid dim

    @pl.when(k == 0)
    def _init():
        acc_ref[...] = jnp.zeros_like(acc_ref)

    # bf16 x bf16 on the MXU, f32 accumulation.
    acc_ref[...] += jnp.dot(mask_ref[...], embed_ref[...],
                            preferred_element_type=jnp.float32)

    @pl.when(k == pl.num_programs(1) - 1)
    def _finalize():
        # Post-matmul normalization with host-provided exact reciprocals, then ReLU.
        out_ref[...] = jnp.maximum(acc_ref[...] * inv_ref[...], 0.0)


def _round_up(x, m):
    return ((x + m - 1) // m) * m


def _bucket_pow2(x, minimum):
    """Round up to the next power of two, at least `minimum` (keeps compile cache hot)."""
    x = max(int(x), int(minimum))
    return 1 << (x - 1).bit_length()


def intra_agg_pallas(mask_bf16, embed_bf16, inv_count, B, D):
    """mask: (B_pad,U_pad) bf16 0/1, embed: (U_pad,D_pad) bf16, inv_count: (B_pad,1) f32.

    Returns relu((mask @ embed) * inv_count)[:B, :D] in float32.
    """
    B_pad, U_pad = mask_bf16.shape
    U_pad2, D_pad = embed_bf16.shape
    assert U_pad == U_pad2
    assert inv_count.shape == (B_pad, 1)

    tile_u = min(1024, U_pad)
    tile_d = min(512, D_pad)
    assert U_pad % tile_u == 0 and D_pad % tile_d == 0

    grid = (D_pad // tile_d, U_pad // tile_u)

    out = pl.pallas_call(
        intra_agg_kernel,
        out_shape=jax.ShapeDtypeStruct((B_pad, D_pad), jnp.float32),
        grid_spec=pltpu.PrefetchScalarGridSpec(
            num_scalar_prefetch=0,
            grid=grid,
            in_specs=[
                # mask tile: all rows, U-tile k
                pl.BlockSpec((B_pad, tile_u), lambda j, k: (0, k)),
                # embed tile: U-tile k, D-tile j
                pl.BlockSpec((tile_u, tile_d), lambda j, k: (k, j)),
                # per-row reciprocal neighbor counts (tiny, resident)
                pl.BlockSpec((B_pad, 1), lambda j, k: (0, 0)),
            ],
            out_specs=pl.BlockSpec((B_pad, tile_d), lambda j, k: (0, j)),
            scratch_shapes=[pltpu.VMEM((B_pad, tile_d), jnp.float32)],
        ),
        compiler_params=pltpu.CompilerParams(
            dimension_semantics=("parallel", "arbitrary"),
            vmem_limit_bytes=32 * 1024 * 1024,
        ),
    )(mask_bf16, embed_bf16, inv_count)
    return out[:B, :D]


# ------------------------- Host-side glue (reference algorithm) -------------
def filter_neighs_ada_threshold(center_scores, neigh_scores, neighs_list, sample_list):
    """NumPy port of the PyTorch reference (ragged, data-dependent -> host)."""
    samp_neighs = []
    samp_scores = []
    for idx in range(len(center_scores)):
        center_score = center_scores[idx][0]
        neigh_score = neigh_scores[idx][:, 0].reshape(-1, 1)
        center_rep = np.repeat(center_score, neigh_score.shape[0]).reshape(-1, 1)
        neighs_indices = neighs_list[idx]
        num_sample = sample_list[idx]
        score_diff = np.abs(center_rep - neigh_score).squeeze()
        score_diff = np.atleast_1d(score_diff)
        sorted_indices = np.argsort(score_diff, kind="stable")
        sorted_scores = score_diff[sorted_indices]
        if len(neigh_scores[idx]) > num_sample + 1:
            selected_neighs = [neighs_indices[n] for n in sorted_indices[:num_sample].tolist()]
            selected_scores = sorted_scores[:num_sample].tolist()
        else:
            selected_neighs = neighs_indices
            selected_scores = score_diff.tolist()
            if isinstance(selected_scores, float):
                selected_scores = [selected_scores]
        samp_neighs.append(set(selected_neighs))
        samp_scores.append(selected_scores)
    return samp_neighs, samp_scores


class IntraAggJAX:
    """JAX/Pallas re-implementation of IntraAgg.forward."""

    def __init__(self, features, feat_dim):
        self.feat_dim = feat_dim
        feats = np.asarray(features, np.float32)       # (num_nodes, D)
        D = feats.shape[1]
        self.d_pad = _bucket_pow2(D, 128)
        # Pad feature columns once and cast to bf16 once (MXU operand dtype).
        feats_p = np.zeros((feats.shape[0], self.d_pad), np.float32)
        feats_p[:, :D] = feats
        self.features_bf16 = jnp.asarray(feats_p, jnp.bfloat16)
        self.features = jnp.asarray(feats)

    def forward(self, nodes, to_neighs_list, batch_scores, neigh_scores, sample_list):
        samp_neighs, samp_scores = filter_neighs_ada_threshold(
            batch_scores, neigh_scores, to_neighs_list, sample_list)
        unique_nodes_list = sorted(set.union(*samp_neighs))
        unique_nodes = {n: i for i, n in enumerate(unique_nodes_list)}

        B, U = len(samp_neighs), len(unique_nodes_list)
        B_pad = _bucket_pow2(B, 8)
        U_pad = _bucket_pow2(U, 128)

        # Host-side padded 0/1 mask (exact in bf16).
        mask_np = np.zeros((B_pad, U_pad), dtype=np.float32)
        column_indices = [unique_nodes[n] for sn in samp_neighs for n in sn]
        row_indices = [i for i in range(B) for _ in range(len(samp_neighs[i]))]
        mask_np[row_indices, column_indices] = 1.0

        # Exact per-row reciprocal neighbor counts, computed on the host.
        counts = np.array([len(sn) for sn in samp_neighs], dtype=np.float32)
        inv_np = np.zeros((B_pad, 1), dtype=np.float32)
        inv_np[:B, 0] = np.where(counts > 0.0, 1.0 / np.maximum(counts, 1.0), 0.0)

        # Pad gather indices with 0: those padded U columns of the mask are zero,
        # so the extra embedding rows contribute nothing (mathematically inert).
        idx_np = np.zeros((U_pad,), dtype=np.int32)
        idx_np[:U] = np.asarray(unique_nodes_list, dtype=np.int32)
        embed_bf16 = self.features_bf16[jnp.asarray(idx_np)]     # (U_pad, D_pad) bf16

        to_feats = intra_agg_pallas(
            jnp.asarray(mask_np, jnp.bfloat16),
            embed_bf16,
            jnp.asarray(inv_np),
            B, self.feat_dim)
        return to_feats, samp_scores


# ----------------------------------- main ------------------------------------
if __name__ == "__main__":
    key = jax.random.PRNGKey(0)
    k_feat, k_cscore, k_nscore, k_neigh = jax.random.split(key, 4)

    num_nodes = 32
    feat_dim = 32
    batch = 8

    # Deterministic "embedding table" (stands in for the `features` lookup).
    features = jax.random.normal(k_feat, (num_nodes, feat_dim), jnp.float32)

    # Batch nodes and their neighbor lists (ragged, 3..6 neighbors each).
    rng = np.random.RandomState(0)
    nodes = list(range(batch))
    to_neighs_list = []
    for i in range(batch):
        n_nb = int(rng.randint(3, 7))
        to_neighs_list.append(list(rng.choice(num_nodes, size=n_nb, replace=False)))
    sample_list = [3] * batch

    # Label-aware scores: (batch, 2) for centers; list of (n_nb_i, 2) for neighbors.
    batch_scores = np.asarray(jax.random.uniform(k_cscore, (batch, 2)), dtype=np.float32)
    neigh_scores = []
    nk = k_nscore
    for i in range(batch):
        nk, sub = jax.random.split(nk)
        neigh_scores.append(
            np.asarray(jax.random.uniform(sub, (len(to_neighs_list[i]), 2)), dtype=np.float32))

    agg = IntraAggJAX(features, feat_dim)
    to_feats, samp_scores = agg.forward(nodes, to_neighs_list, batch_scores,
                                        neigh_scores, sample_list)
    to_feats = jax.block_until_ready(to_feats)

    # NumPy reference of the kernel math (bf16-cast embed to match MXU operand dtype;
    # accumulation and normalization in f32, so only ulp-level differences remain).
    samp_neighs, _ = filter_neighs_ada_threshold(batch_scores, neigh_scores,
                                                 to_neighs_list, sample_list)
    unique_nodes_list = sorted(set.union(*samp_neighs))
    unique_nodes = {n: i for i, n in enumerate(unique_nodes_list)}
    mask_ref = np.zeros((len(samp_neighs), len(unique_nodes)), dtype=np.float32)
    col = [unique_nodes[n] for sn in samp_neighs for n in sn]
    row = [i for i in range(len(samp_neighs)) for _ in range(len(samp_neighs[i]))]
    mask_ref[row, col] = 1.0
    mask_ref = mask_ref / mask_ref.sum(1, keepdims=True)
    embed_ref = np.asarray(
        jnp.asarray(np.asarray(features)[np.asarray(unique_nodes_list)],
                    jnp.bfloat16).astype(jnp.float32))
    ref = np.maximum(mask_ref @ embed_ref, 0.0)

    assert to_feats.shape == (batch, feat_dim)
    np.testing.assert_allclose(np.asarray(to_feats), ref, rtol=1e-3, atol=1e-4)
    print("KERNEL_OK")
</pallas_src>

<mosaic_0001>
module attributes {stable_mosaic.version = 11 : i64} {
  func.func @intra_agg_kernel(%arg0: i32, %arg1: i32, %arg2: memref<8x128xbf16, #tpu.memory_space<vmem>>, %arg3: memref<128x128xbf16, #tpu.memory_space<vmem>>, %arg4: memref<8x1xf32, #tpu.memory_space<vmem>>, %arg5: memref<8x128xf32, #tpu.memory_space<vmem>>, %arg6: memref<8x128xf32, #tpu.memory_space<vmem>>) attributes {dimension_semantics = [#tpu.dimension_semantics<parallel>, #tpu.dimension_semantics<arbitrary>], iteration_bounds = array<i64: 1, 1>, scalar_prefetch = 0 : i64, scratch_operands = 1 : i64, tpu.core_type = #tpu.core_type<tc>, window_params = [{transform_indices = @transform_0, window_bounds = array<i64: 8, 128>}, {transform_indices = @transform_1, window_bounds = array<i64: 128, 128>}, {pipeline_mode = #tpu.pipeline_mode<synchronous>, transform_indices = @transform_2, window_bounds = array<i64: 8, 1>}, {transform_indices = @transform_3, window_bounds = array<i64: 8, 128>}]} {
    %c0_i32 = arith.constant 0 : i32
    %0 = arith.cmpi eq, %arg1, %c0_i32 : i32
    %1 = arith.extui %0 : i1 to i32
    %c0_i32_0 = arith.constant 0 : i32
    %2 = arith.cmpi ne, %1, %c0_i32_0 : i32
    scf.if %2 {
      %cst_10 = arith.constant 0.000000e+00 : f32
      %12 = vector.broadcast %cst_10 : f32 to vector<8x128xf32>
      %c0_11 = arith.constant 0 : index
      %c0_12 = arith.constant 0 : index
      %13 = vector.load %arg6[%c0_11, %c0_12] : memref<8x128xf32, #tpu.memory_space<vmem>>, vector<8x128xf32>
      tpu.vector_store %arg6[%c0_11, %c0_12], %12 {strides = array<i32>} : memref<8x128xf32, #tpu.memory_space<vmem>>, vector<8x128xf32>,
    } else {
    }
    %c0 = arith.constant 0 : index
    %c0_1 = arith.constant 0 : index
    %3 = vector.load %arg6[%c0, %c0_1] : memref<8x128xf32, #tpu.memory_space<vmem>>, vector<8x128xf32>
    %c0_2 = arith.constant 0 : index
    %c0_3 = arith.constant 0 : index
    %4 = vector.load %arg2[%c0_2, %c0_3] : memref<8x128xbf16, #tpu.memory_space<vmem>>, vector<8x128xbf16>
    %c0_4 = arith.constant 0 : index
    %c0_5 = arith.constant 0 : index
    %5 = vector.load %arg3[%c0_4, %c0_5] : memref<128x128xbf16, #tpu.memory_space<vmem>>, vector<128x128xbf16>
    %cst = arith.constant dense<0.000000e+00> : vector<8x128xf32>
    %6 = tpu.matmul %4, %5, %cst {dimension_numbers = #tpu.dot_dimension_numbers<[1], [0], [0], [1], [0, 0, 1, 1], [], []>} : vector<8x128xbf16>, vector<128x128xbf16>, vector<8x128xf32> -> vector<8x128xf32>
    %7 = arith.addf %3, %6 : vector<8x128xf32>
    %c0_6 = arith.constant 0 : index
    %c0_7 = arith.constant 0 : index
    %8 = vector.load %arg6[%c0_6, %c0_7] : memref<8x128xf32, #tpu.memory_space<vmem>>, vector<8x128xf32>
    tpu.vector_store %arg6[%c0_6, %c0_7], %7 {strides = array<i32>} : memref<8x128xf32, #tpu.memory_space<vmem>>, vector<8x128xf32>,
    %c0_i32_8 = arith.constant 0 : i32
    %9 = arith.cmpi eq, %arg1, %c0_i32_8 : i32
    %10 = arith.extui %9 : i1 to i32
    %c0_i32_9 = arith.constant 0 : i32
    %11 = arith.cmpi ne, %10, %c0_i32_9 : i32
    scf.if %11 {
      %c0_10 = arith.constant 0 : index
      %c0_11 = arith.constant 0 : index
      %12 = vector.load %arg6[%c0_10, %c0_11] : memref<8x128xf32, #tpu.memory_space<vmem>>, vector<8x128xf32>
      %c0_12 = arith.constant 0 : index
      %c0_13 = arith.constant 0 : index
      %13 = vector.load %arg4[%c0_12, %c0_13] : memref<8x1xf32, #tpu.memory_space<vmem>>, vector<8x1xf32>
      %14 = vector.broadcast %13 : vector<8x1xf32> to vector<8x128xf32>
      %15 = arith.mulf %12, %14 : vector<8x128xf32>
      %cst_14 = arith.constant 0.000000e+00 : f32
      %16 = vector.broadcast %cst_14 : f32 to vector<8x128xf32>
      %17 = arith.maximumf %15, %16 : vector<8x128xf32>
      %c0_15 = arith.constant 0 : index
      %c0_16 = arith.constant 0 : index
      %18 = vector.load %arg5[%c0_15, %c0_16] : memref<8x128xf32, #tpu.memory_space<vmem>>, vector<8x128xf32>
      tpu.vector_store %arg5[%c0_15, %c0_16], %17 {strides = array<i32>} : memref<8x128xf32, #tpu.memory_space<vmem>>, vector<8x128xf32>,
    } else {
    }
    return
  }
  func.func @transform_0(%arg0: i32, %arg1: i32) -> (i32, i32) {
    %c0_i32 = arith.constant 0 : i32
    %c0_i32_0 = arith.constant 0 : i32
    return %c0_i32, %arg1 : i32, i32
  }
  func.func @transform_1(%arg0: i32, %arg1: i32) -> (i32, i32) {
    %c0_i32 = arith.constant 0 : i32
    return %arg1, %arg0 : i32, i32
  }
  func.func @transform_2(%arg0: i32, %arg1: i32) -> (i32, i32) {
    %c0_i32 = arith.constant 0 : i32
    %c0_i32_0 = arith.constant 0 : i32
    %c0_i32_1 = arith.constant 0 : i32
    return %c0_i32, %c0_i32_0 : i32, i32
  }
  func.func @transform_3(%arg0: i32, %arg1: i32) -> (i32, i32) {
    %c0_i32 = arith.constant 0 : i32
    %c0_i32_0 = arith.constant 0 : i32
    return %c0_i32, %arg0 : i32, i32
  }
}

</mosaic_0001>

<bundles_post_ra>
// kernel: tpu_custom_call.1
= control target key start
LH: loop header
LB: loop body
LE: loop exit
PB: predicated region body
PF: predicated region fallthrough
CT: control target
= control target key end

     0   :  { %8 = vsyncpa [#allocation4], 0  ;;  %s329_s0 = inlined_call_operand.vmem [shape: bf16[8,128], index: 0, kind: input, shape index: {}]   ;;  %s330_s1 = inlined_call_operand.hbm [shape: bf16[128,128], index: 1, kind: input, shape index: {}]   ;;  %s331_s2 = inlined_call_operand.vmem [shape: f32[8,1], index: 2, kind: input, shape index: {}]   ;;  %s332_s3 = inlined_call_operand.hbm [shape: f32[8,128], index: 3, kind: output, shape index: {}]  }
   0x1   :  { %9 = vsyncpa [#allocation5], 0  ;;  %s272_s12 = smov [#allocation3]   ;;  %s224_s16 = scalar_lea.hbm %s330_s1, 1024 }
   0x2   :  { %s17_s13 = sshll.u32 %s272_s12, 4  ;;  %p225_p0 = scmp.ne.s32.totalorder %s330_s1, %s224_s16  ;;  %s18_s13 = int_to_ptr.vmem [resolvable:$true] %s17_s13 }
   0x3   :  { %p228_p1 = scmp.lt.u32.totalorder %s224_s16, %s330_s1 }
   0x5   :  { %p230_p2 = pnand %p228_p1, %p225_p0 }
   0x7   :  { %233 = shalt.err (!%p230_p2)
}
   0x8   :  { %s234_s21 = scalar_lea.vmem %s18_s13, 1024  ;;  %p239_p4 = scmp.lt.s32.totalorder %s18_s13, %s18_s13 }
   0x9   :  { %p235_p3 = scmp.ne.s32.totalorder %s18_s13, %s234_s21  ;;  %p240_p5 = scmp.lt.s32.totalorder %s234_s21, %s234_s21 }
   0xb   :  { %p241_p6 = por %p240_p5, %p239_p4 }
   0xd   :  { %p242_p7 = pnand %p241_p6, %p235_p3 }
   0xf   :  { %245 = shalt.err (!%p242_p7)
}
  0x10   :  { %s273_s22 = smov 64   ;;  %s274_s23 = smov 4  }
  0x11   :  { %23 = dma.hbm_to_vmem [thread:$0]  %s330_s1, 1024, %s18_s13, [#allocation4], %s273_s22, %s273_s22, %s274_s23  }
  0x12   :  { %268 = dma.done.wait [#allocation4], 1024  }
  0x13   :  { %269 = vsyncadd [#allocation4], 4294966272  ;;  %v275_v0 = vmov 0.0   ;;  %vm276_vm0 = vmmov 0   ;;  %v277_v1 = vmov 0   ;;  %v216_v2 = vld [vmem:[#allocation3] sm:$0xff]  }
  0x14   :  { %188 = vmatprep.subr.bf16.mxu0 %v275_v0  ;;  %204 = vmatprep.mubr.msk.bf16.mxu0 %vm276_vm0, %v275_v0  ;;  %v217_v3 = vld [vmem:[#allocation3 + $0x8] sm:$0xff]   ;;  %v218_v4 = vld [vmem:[#allocation3 + $0x10] sm:$0xff]   ;;  %v147_v5 = vld [vmem:[%s331_s2] sm:$0xff]  ;;  %s278_s2 = smov [#allocation6]  }
  0x15   :  { %215 = vset.pattern.permute.xlu0 %v277_v1  ;;  %189 = vmatpush3.bf16.msra.mxu0 %v216_v2  ;;  %v219_v6 = vld [vmem:[#allocation3 + $0x18] sm:$0xff]   ;;  %v220_v7 = vld [vmem:[#allocation3 + $0x20] sm:$0xff]   ;;  %v221_v8 = vld [vmem:[#allocation3 + $0x28] sm:$0xff]   ;;  %s162_s29 = sshll.u32 %s278_s2, 4  ;;  %s163_s29 = int_to_ptr.vmem [resolvable:$true] %s162_s29 }
  0x16   :  { %190 = vmatprep.subr.bf16.mxu0 %v275_v0  ;;  %150 = vperm.xlu0 %215, %v147_v5   ;;  %v222_v9 = vld [vmem:[#allocation3 + $0x30] sm:$0xff]   ;;  %v223_v10 = vld [vmem:[#allocation3 + $0x38] sm:$0xff]   ;;  %v36_v11 = vld [vmem:[%s329_s0] sm:$0xf]  ;;  %s246_s30 = scalar_lea.vmem %s163_s29, 128  ;;  %p251_p9 = scmp.lt.s32.totalorder %s163_s29, %s163_s29 }
  0x17   :  { %p247_p8 = scmp.ne.s32.totalorder %s163_s29, %s246_s30  ;;  %p252_p10 = scmp.lt.s32.totalorder %s246_s30, %s246_s30 }
  0x19   :  { %191 = vmatpush3.bf16.msra.mxu0 %v217_v3  ;;  %p253_p11 = por %p252_p10, %p251_p9 }
  0x1a   :  { %192 = vmatprep.subr.bf16.mxu0 %v275_v0 }
  0x1b   :  { %p254_p12 = pnand %p253_p11, %p247_p8 }
  0x1d   :  { %193 = vmatpush3.bf16.msra.mxu0 %v218_v4 }
  0x1e   :  { %194 = vmatprep.subr.bf16.mxu0 %v275_v0 }
  0x21   :  { %195 = vmatpush3.bf16.msra.mxu0 %v219_v6 }
  0x22   :  { %196 = vmatprep.subr.bf16.mxu0 %v275_v0 }
  0x25   :  { %197 = vmatpush3.bf16.msra.mxu0 %v220_v7 }
  0x26   :  { %198 = vmatprep.subr.bf16.mxu0 %v275_v0 }
  0x29   :  { %199 = vmatpush3.bf16.msra.mxu0 %v221_v8 }
  0x2a   :  { %200 = vmatprep.subr.bf16.mxu0 %v275_v0 }
  0x2d   :  { %201 = vmatpush3.bf16.msra.mxu0 %v222_v9 }
  0x2e   :  { %202 = vmatprep.subr.bf16.mxu0 %v275_v0 }
  0x31   :  { %203 = vmatpush3.bf16.msra.mxu0 %v223_v10 }
  0x34   :  { %205 = vmatmul.mubr.bf16.vlgmr.msra.gmra.mrb[0].mxu0 %v36_v11 }
  0x95   :  { %v151_v12 = vpop.permute.xlu0 %150 }
 0x107   :  { %v135_v13 = vpop.f32.mrb[0].mxu0 }
 0x108   :  { %v153_v14 = vmul.f32 %v151_v12, %v135_v13  ;;  %v206_v15 = vpop.f32.mrb[1].mxu0 }
 0x109   :  { %v138_v16 = vpop.f32.mrb[2].mxu0 }
 0x10a   :  { %v154_v17 = vmax.f32 %v153_v14, 0.0  ;;  %v207_v18 = vpop.f32.mrb[3].mxu0 }
 0x10c   :  { %155 = vst [vmem:[#allocation6] sm:$0xff] %v154_v17 }
 0x10d   :  { %257 = shalt.err (!%p254_p12)
}
 0x10e   :  { %s258_s5 = scalar_lea.hbm %s332_s3, 128 }
 0x10f   :  { %p259_p13 = scmp.ne.s32.totalorder %s332_s3, %s258_s5  ;;  %p262_p0 = scmp.lt.u32.totalorder %s258_s5, %s332_s3 }
 0x111   :  { %p264_p1 = pnand %p262_p0, %p259_p13 }
 0x113   :  { %267 = shalt.err (!%p264_p1)
}
 0x114   :  { %165 = dma.vmem_to_hbm [thread:$0]  %s163_s29, 128, %s332_s3, [#allocation5]  }
 0x115   :  { %270 = dma.done.wait [#allocation5], 128  }
 0x116   :  { %271 = vsyncadd [#allocation5], 4294967168 }
 0x117   :  { %169 = vsyncpa [#allocation4], 1 }
 0x118   :  { %170 = vsyncpa [#allocation5], 1 }

</bundles_post_ra>
